<compile_context>
chip_gen: v6e
topology: v6e:2x2x1
jax: 0.10.0
libtpu: 0.0.40
codegen_flags: <defaults>
</compile_context>

<pallas_src>
import functools
import numpy as np
import jax
import jax.numpy as jnp
from jax import lax
from jax.experimental import pallas as pl
from jax.experimental.pallas import tpu as pltpu

EPS = 1e-5


def _down_final_kernel(x_ref, wb1_ref, wb2_ref, bn1_ref, bn2_ref,
                       esel_ref, eexp_ref, sdn_ref, sup_ref, out_ref,
                       *, inv_count):
    # x_ref   : (N*H, W*Cin)       bf16  input rows, (w, c) folded into lanes
    # wb1_ref : (3, W*Cin, W*Cout) bf16  banded conv1 weights, one per row tap dy
    # wb2_ref : (3, W*Cout, W*Cout)bf16  banded conv2 weights
    # bn1/bn2 : (2, Cout)          f32   rows = [gamma, beta]
    # esel    : (W*Cout, Cout)     f32   folded-lane -> channel reduction
    # eexp    : (Cout, W*Cout)     f32   channel -> folded-lane expansion
    # sdn/sup : (N*H, N*H)         f32   boundary-masked row shifts:
    #                                    (sdn@t)[r]=t[r-1], (sup@t)[r]=t[r+1]
    # out_ref : (N*H, W*Cout)      f32   lane-dense output slab (128 lanes)
    esel = esel_ref[...]
    eexp = eexp_ref[...]
    sdn = sdn_ref[...]
    sup = sup_ref[...]
    # row selector used to batch the two tiny BN matmuls without a concatenate
    row1 = lax.broadcasted_iota(jnp.int32, (2, 1), 0) == 1

    def conv3x3(lhs_b16, wb_ref):
        # 3 banded MXU matmuls (one per row tap dy) on the full row slab.
        t0 = jnp.dot(lhs_b16, wb_ref[0], preferred_element_type=jnp.float32)
        t1 = jnp.dot(lhs_b16, wb_ref[1], preferred_element_type=jnp.float32)
        t2 = jnp.dot(lhs_b16, wb_ref[2], preferred_element_type=jnp.float32)
        # acc[r] = t0[r-1] + t1[r] + t2[r+1]; rows that would cross the image /
        # batch boundary are zeroed inside sdn/sup (== row zero-padding).
        return (jnp.dot(sdn, t0, preferred_element_type=jnp.float32) + t1 +
                jnp.dot(sup, t2, preferred_element_type=jnp.float32))

    def bn_relu(acc, bn_ref):
        # Fused training-mode BatchNorm (biased batch variance) + ReLU.
        # NOTE: var = E[x^2] - E[x]^2 in f32 is fine at this sample count; use a
        # centered / Welford variance for production-scale counts.
        csum = jnp.sum(acc, axis=0, keepdims=True)                      # (1, L)
        csum2 = jnp.sum(acc * acc, axis=0, keepdims=True)               # (1, L)
        stats = jnp.where(row1, csum2, csum)                            # (2, L)
        ch = jnp.dot(stats, esel, preferred_element_type=jnp.float32)   # (2, Cout)
        mean = ch[0:1, :] * inv_count
        var = jnp.maximum(ch[1:2, :] * inv_count - mean * mean, 0.0)
        scale = bn_ref[0:1, :] * lax.rsqrt(var + EPS)                   # gamma/sqrt(var+eps)
        shift = bn_ref[1:2, :] - mean * scale                           # beta - mean*scale
        f = jnp.dot(jnp.where(row1, shift, scale), eexp,
                    preferred_element_type=jnp.float32)                 # (2, L)
        return jnp.maximum(acc * f[0:1, :] + f[1:2, :], 0.0)

    y1 = bn_relu(conv3x3(x_ref[...], wb1_ref), bn1_ref)                 # (N*H, L) f32
    y2 = bn_relu(conv3x3(y1.astype(jnp.bfloat16), wb2_ref), bn2_ref)
    out_ref[...] = y2


def _banded_conv_weights(k_oihw, W):
    """OIHW 3x3 weights -> (3, W*Cin, W*Cout) bf16 banded block matrices.

    Entry [(j+dx-1)*Cin + ci, j*Cout + co] = K[dy, dx, ci, co] for output column
    j whose source column j+dx-1 lies inside the image; width zero-padding is
    encoded by the missing band entries."""
    k_hwio = jnp.transpose(k_oihw, (2, 3, 1, 0)).astype(jnp.float32)    # (3,3,Cin,Cout)
    shift = np.zeros((3, W, W), np.float32)
    for tx in range(3):
        for j in range(W):
            sj = j + tx - 1
            if 0 <= sj < W:
                shift[tx, sj, j] = 1.0
    bands = [sum(jnp.kron(jnp.asarray(shift[tx]), k_hwio[ty, tx]) for tx in range(3))
             for ty in range(3)]
    return jnp.stack(bands, axis=0).astype(jnp.bfloat16)


def _row_shift_mats(N, H):
    """Boundary-masked row-shift matrices: (sdn@t)[r]=t[r-1], (sup@t)[r]=t[r+1],
    with rows zeroed where the shift would cross an image (batch) boundary."""
    M = N * H
    sdn = np.eye(M, k=-1, dtype=np.float32)
    sup = np.eye(M, k=1, dtype=np.float32)
    for n in range(N):
        sdn[n * H, :] = 0.0              # h == 0   has no row above
        sup[n * H + H - 1, :] = 0.0      # h == H-1 has no row below
    return jnp.asarray(sdn), jnp.asarray(sup)


def down_final_forward(x1, x2, x3, x4, params):
    # torch: cat([x4, cat([x3, cat([x2, x1])])]) -> channel order [x4, x3, x2, x1]
    x = jnp.concatenate([x4, x3, x2, x1], axis=1)                       # (N, Cin, H, W)
    N, Cin, H, W = x.shape
    Cout = params["w1"].shape[0]
    L = W * Cout

    # NCHW -> NHWC -> fold (w, c) into the 128-lane axis; bf16 matmul operand.
    # TODO(synk): at production sizes, fuse this concat/transpose into the kernel
    # (separate in_specs + Cin-split banded weights), tile the row axis with a
    # "parallel" grid dimension (megacore on v7x) using a BN stats-pass/apply-pass
    # split, and size tiles for the 64 MiB v7x VMEM via vmem_limit_bytes.
    x2d = jnp.transpose(x, (0, 2, 3, 1)).reshape(N * H, W * Cin).astype(jnp.bfloat16)

    wb1 = _banded_conv_weights(params["w1"], W)         # (3, W*Cin,  W*Cout) bf16
    wb2 = _banded_conv_weights(params["w2"], W)         # (3, W*Cout, W*Cout) bf16
    bn1 = jnp.stack([params["g1"], params["beta1"]]).astype(jnp.float32)   # (2, Cout)
    bn2 = jnp.stack([params["g2"], params["beta2"]]).astype(jnp.float32)
    # NOTE: conv biases b1/b2 cancel exactly under training-mode BatchNorm; if the
    # block is ever run with eval-mode running stats they must be re-added.

    esel = jnp.asarray(np.kron(np.ones((W, 1), np.float32),
                               np.eye(Cout, dtype=np.float32)))          # (W*Cout, Cout)
    eexp = jnp.asarray(np.kron(np.ones((1, W), np.float32),
                               np.eye(Cout, dtype=np.float32)))          # (Cout, W*Cout)
    sdn, sup = _row_shift_mats(N, H)

    kernel = functools.partial(_down_final_kernel, inv_count=1.0 / float(N * H * W))

    out2d = pl.pallas_call(
        kernel,
        out_shape=jax.ShapeDtypeStruct((N * H, L), jnp.float32),
        grid=(1,),
        in_specs=[
            pl.BlockSpec(x2d.shape, lambda i: (0, 0)),
            pl.BlockSpec(wb1.shape, lambda i: (0, 0, 0)),
            pl.BlockSpec(wb2.shape, lambda i: (0, 0, 0)),
            pl.BlockSpec(bn1.shape, lambda i: (0, 0)),
            pl.BlockSpec(bn2.shape, lambda i: (0, 0)),
            pl.BlockSpec(esel.shape, lambda i: (0, 0)),
            pl.BlockSpec(eexp.shape, lambda i: (0, 0)),
            pl.BlockSpec(sdn.shape, lambda i: (0, 0)),
            pl.BlockSpec(sup.shape, lambda i: (0, 0)),
        ],
        out_specs=pl.BlockSpec((N * H, L), lambda i: (0, 0)),
        compiler_params=pltpu.CompilerParams(dimension_semantics=("arbitrary",)),
    )(x2d, wb1, wb2, bn1, bn2, esel, eexp, sdn, sup)

    out = out2d.reshape(N, H, W, Cout)
    return jnp.transpose(out, (0, 3, 1, 2))                             # back to NCHW


def _ref_forward(x1, x2, x3, x4, params):
    # pure-JAX f32 reference of the PyTorch forward (for correctness check)
    x = jnp.concatenate([x4, x3, x2, x1], axis=1)
    x = jnp.transpose(x, (0, 2, 3, 1)).astype(jnp.float32)

    def conv_bn_relu(x, w_oihw, b, g, beta):
        w_hwio = jnp.transpose(w_oihw, (2, 3, 1, 0))
        y = lax.conv_general_dilated(
            x, w_hwio, (1, 1), ((1, 1), (1, 1)),
            dimension_numbers=("NHWC", "HWIO", "NHWC")) + b
        mean = jnp.mean(y, axis=(0, 1, 2), keepdims=True)
        var = jnp.mean((y - mean) ** 2, axis=(0, 1, 2), keepdims=True)
        y = (y - mean) * lax.rsqrt(var + EPS) * g + beta
        return jnp.maximum(y, 0.0)

    y = conv_bn_relu(x, params["w1"], params["b1"], params["g1"], params["beta1"])
    y = conv_bn_relu(y, params["w2"], params["b2"], params["g2"], params["beta2"])
    return jnp.transpose(y, (0, 3, 1, 2))


if __name__ == "__main__":
    key = jax.random.PRNGKey(0)
    ks = jax.random.split(key, 12)
    N, Cpart, H, W = 2, 4, 16, 16
    channel_in, channel_out = 4 * Cpart, 8

    x1 = jax.random.normal(ks[0], (N, Cpart, H, W), jnp.float32)
    x2 = jax.random.normal(ks[1], (N, Cpart, H, W), jnp.float32)
    x3 = jax.random.normal(ks[2], (N, Cpart, H, W), jnp.float32)
    x4 = jax.random.normal(ks[3], (N, Cpart, H, W), jnp.float32)

    params = {
        "w1": 0.1 * jax.random.normal(ks[4], (channel_out, channel_in, 3, 3), jnp.float32),
        "b1": 0.1 * jax.random.normal(ks[5], (channel_out,), jnp.float32),
        "g1": 1.0 + 0.1 * jax.random.normal(ks[6], (channel_out,), jnp.float32),
        "beta1": 0.1 * jax.random.normal(ks[7], (channel_out,), jnp.float32),
        "w2": 0.1 * jax.random.normal(ks[8], (channel_out, channel_out, 3, 3), jnp.float32),
        "b2": 0.1 * jax.random.normal(ks[9], (channel_out,), jnp.float32),
        "g2": 1.0 + 0.1 * jax.random.normal(ks[10], (channel_out,), jnp.float32),
        "beta2": 0.1 * jax.random.normal(ks[11], (channel_out,), jnp.float32),
    }

    out = jax.jit(down_final_forward)(x1, x2, x3, x4, params)
    out = jax.block_until_ready(out)

    ref = _ref_forward(x1, x2, x3, x4, params)
    assert out.shape == (N, channel_out, H, W)
    # bf16 MXU operands (per perf review) -> tolerance relaxed from 1e-3 to 2e-2.
    np.testing.assert_allclose(np.asarray(out), np.asarray(ref), rtol=2e-2, atol=2e-2)
    print("KERNEL_OK")
</pallas_src>

<mosaic_0001>
module attributes {stable_mosaic.version = 11 : i64} {
  func.func @_down_final_kernel(%arg0: i32, %arg1: memref<32x256xbf16, #tpu.memory_space<vmem>>, %arg2: memref<3x256x128xbf16, #tpu.memory_space<vmem>>, %arg3: memref<3x128x128xbf16, #tpu.memory_space<vmem>>, %arg4: memref<2x8xf32, #tpu.memory_space<vmem>>, %arg5: memref<2x8xf32, #tpu.memory_space<vmem>>, %arg6: memref<128x8xf32, #tpu.memory_space<vmem>>, %arg7: memref<8x128xf32, #tpu.memory_space<vmem>>, %arg8: memref<32x32xf32, #tpu.memory_space<vmem>>, %arg9: memref<32x32xf32, #tpu.memory_space<vmem>>, %arg10: memref<32x128xf32, #tpu.memory_space<vmem>>) attributes {dimension_semantics = [#tpu.dimension_semantics<arbitrary>], iteration_bounds = array<i64: 1>, scalar_prefetch = 0 : i64, scratch_operands = 0 : i64, tpu.core_type = #tpu.core_type<tc>, window_params = [{pipeline_mode = #tpu.pipeline_mode<synchronous>, transform_indices = @transform_0, window_bounds = array<i64: 32, 256>}, {pipeline_mode = #tpu.pipeline_mode<synchronous>, transform_indices = @transform_1, window_bounds = array<i64: 3, 256, 128>}, {pipeline_mode = #tpu.pipeline_mode<synchronous>, transform_indices = @transform_2, window_bounds = array<i64: 3, 128, 128>}, {pipeline_mode = #tpu.pipeline_mode<synchronous>, transform_indices = @transform_3, window_bounds = array<i64: 2, 8>}, {pipeline_mode = #tpu.pipeline_mode<synchronous>, transform_indices = @transform_4, window_bounds = array<i64: 2, 8>}, {pipeline_mode = #tpu.pipeline_mode<synchronous>, transform_indices = @transform_5, window_bounds = array<i64: 128, 8>}, {pipeline_mode = #tpu.pipeline_mode<synchronous>, transform_indices = @transform_6, window_bounds = array<i64: 8, 128>}, {pipeline_mode = #tpu.pipeline_mode<synchronous>, transform_indices = @transform_7, window_bounds = array<i64: 32, 32>}, {pipeline_mode = #tpu.pipeline_mode<synchronous>, transform_indices = @transform_8, window_bounds = array<i64: 32, 32>}, {pipeline_mode = #tpu.pipeline_mode<synchronous>, transform_indices = @transform_9, window_bounds = array<i64: 32, 128>}]} {
    %c0 = arith.constant 0 : index
    %c0_0 = arith.constant 0 : index
    %0 = vector.load %arg6[%c0, %c0_0] : memref<128x8xf32, #tpu.memory_space<vmem>>, vector<128x8xf32>
    %c0_1 = arith.constant 0 : index
    %c0_2 = arith.constant 0 : index
    %1 = vector.load %arg7[%c0_1, %c0_2] : memref<8x128xf32, #tpu.memory_space<vmem>>, vector<8x128xf32>
    %c0_3 = arith.constant 0 : index
    %c0_4 = arith.constant 0 : index
    %2 = vector.load %arg8[%c0_3, %c0_4] : memref<32x32xf32, #tpu.memory_space<vmem>>, vector<32x32xf32>
    %c0_5 = arith.constant 0 : index
    %c0_6 = arith.constant 0 : index
    %3 = vector.load %arg9[%c0_5, %c0_6] : memref<32x32xf32, #tpu.memory_space<vmem>>, vector<32x32xf32>
    %4 = tpu.iota {dimensions = array<i32: 0>} : vector<2x1xi32>
    %c1_i32 = arith.constant 1 : i32
    %5 = vector.broadcast %c1_i32 : i32 to vector<2x1xi32>
    %6 = arith.cmpi eq, %4, %5 : vector<2x1xi32>
    %c0_7 = arith.constant 0 : index
    %c0_8 = arith.constant 0 : index
    %7 = vector.load %arg1[%c0_7, %c0_8] : memref<32x256xbf16, #tpu.memory_space<vmem>>, vector<32x256xbf16>
    %c0_9 = arith.constant 0 : index
    %c0_10 = arith.constant 0 : index
    %c0_11 = arith.constant 0 : index
    %8 = vector.load %arg2[%c0_9, %c0_10, %c0_11] : memref<3x256x128xbf16, #tpu.memory_space<vmem>>, vector<1x256x128xbf16>
    %9 = vector.shape_cast %8 : vector<1x256x128xbf16> to vector<256x128xbf16>
    %cst = arith.constant dense<0.000000e+00> : vector<32x128xf32>
    %10 = tpu.matmul %7, %9, %cst {dimension_numbers = #tpu.dot_dimension_numbers<[1], [0], [0], [1], [0, 0, 1, 1], [], []>} : vector<32x256xbf16>, vector<256x128xbf16>, vector<32x128xf32> -> vector<32x128xf32>
    %c1 = arith.constant 1 : index
    %c0_12 = arith.constant 0 : index
    %c0_13 = arith.constant 0 : index
    %11 = vector.load %arg2[%c1, %c0_12, %c0_13] : memref<3x256x128xbf16, #tpu.memory_space<vmem>>, vector<1x256x128xbf16>
    %12 = vector.shape_cast %11 : vector<1x256x128xbf16> to vector<256x128xbf16>
    %cst_14 = arith.constant dense<0.000000e+00> : vector<32x128xf32>
    %13 = tpu.matmul %7, %12, %cst_14 {dimension_numbers = #tpu.dot_dimension_numbers<[1], [0], [0], [1], [0, 0, 1, 1], [], []>} : vector<32x256xbf16>, vector<256x128xbf16>, vector<32x128xf32> -> vector<32x128xf32>
    %c2 = arith.constant 2 : index
    %c0_15 = arith.constant 0 : index
    %c0_16 = arith.constant 0 : index
    %14 = vector.load %arg2[%c2, %c0_15, %c0_16] : memref<3x256x128xbf16, #tpu.memory_space<vmem>>, vector<1x256x128xbf16>
    %15 = vector.shape_cast %14 : vector<1x256x128xbf16> to vector<256x128xbf16>
    %cst_17 = arith.constant dense<0.000000e+00> : vector<32x128xf32>
    %16 = tpu.matmul %7, %15, %cst_17 {dimension_numbers = #tpu.dot_dimension_numbers<[1], [0], [0], [1], [0, 0, 1, 1], [], []>} : vector<32x256xbf16>, vector<256x128xbf16>, vector<32x128xf32> -> vector<32x128xf32>
    %cst_18 = arith.constant dense<0.000000e+00> : vector<32x128xf32>
    %17 = tpu.matmul %2, %10, %cst_18 {dimension_numbers = #tpu.dot_dimension_numbers<[1], [0], [0], [1], [0, 0, 1, 1], [], []>} : vector<32x32xf32>, vector<32x128xf32>, vector<32x128xf32> -> vector<32x128xf32>
    %18 = arith.addf %17, %13 : vector<32x128xf32>
    %cst_19 = arith.constant dense<0.000000e+00> : vector<32x128xf32>
    %19 = tpu.matmul %3, %16, %cst_19 {dimension_numbers = #tpu.dot_dimension_numbers<[1], [0], [0], [1], [0, 0, 1, 1], [], []>} : vector<32x32xf32>, vector<32x128xf32>, vector<32x128xf32> -> vector<32x128xf32>
    %20 = arith.addf %18, %19 : vector<32x128xf32>
    %cst_20 = arith.constant dense<0.000000e+00> : vector<128xf32>
    %21 = vector.multi_reduction <add>, %20, %cst_20 [0] : vector<32x128xf32> to vector<128xf32>
    %22 = vector.shape_cast %21 : vector<128xf32> to vector<1x128xf32>
    %23 = arith.mulf %20, %20 : vector<32x128xf32>
    %cst_21 = arith.constant dense<0.000000e+00> : vector<128xf32>
    %24 = vector.multi_reduction <add>, %23, %cst_21 [0] : vector<32x128xf32> to vector<128xf32>
    %25 = vector.shape_cast %24 : vector<128xf32> to vector<1x128xf32>
    %26 = vector.shape_cast %6 : vector<2x1xi1> to vector<2x1xi1>
    %27 = vector.broadcast %26 : vector<2x1xi1> to vector<2x128xi1>
    %28 = vector.shape_cast %25 : vector<1x128xf32> to vector<1x128xf32>
    %29 = vector.broadcast %28 : vector<1x128xf32> to vector<2x128xf32>
    %30 = vector.shape_cast %22 : vector<1x128xf32> to vector<1x128xf32>
    %31 = vector.broadcast %30 : vector<1x128xf32> to vector<2x128xf32>
    %32 = arith.select %27, %29, %31 : vector<2x128xi1>, vector<2x128xf32>
    %cst_22 = arith.constant dense<0.000000e+00> : vector<2x8xf32>
    %33 = tpu.matmul %32, %0, %cst_22 {dimension_numbers = #tpu.dot_dimension_numbers<[1], [0], [0], [1], [0, 0, 1, 1], [], []>} : vector<2x128xf32>, vector<128x8xf32>, vector<2x8xf32> -> vector<2x8xf32>
    %34 = vector.extract_strided_slice %33 {offsets = [0, 0], sizes = [1, 8], strides = [1, 1]} : vector<2x8xf32> to vector<1x8xf32>
    %cst_23 = arith.constant 0.001953125 : f32
    %35 = vector.broadcast %cst_23 : f32 to vector<1x8xf32>
    %36 = arith.mulf %34, %35 : vector<1x8xf32>
    %37 = vector.extract_strided_slice %33 {offsets = [1, 0], sizes = [1, 8], strides = [1, 1]} : vector<2x8xf32> to vector<1x8xf32>
    %cst_24 = arith.constant 0.001953125 : f32
    %38 = vector.broadcast %cst_24 : f32 to vector<1x8xf32>
    %39 = arith.mulf %37, %38 : vector<1x8xf32>
    %40 = arith.mulf %36, %36 : vector<1x8xf32>
    %41 = arith.subf %39, %40 : vector<1x8xf32>
    %cst_25 = arith.constant 0.000000e+00 : f32
    %42 = vector.broadcast %cst_25 : f32 to vector<1x8xf32>
    %43 = arith.maximumf %41, %42 : vector<1x8xf32>
    %c0_26 = arith.constant 0 : index
    %c0_27 = arith.constant 0 : index
    %44 = vector.load %arg4[%c0_26, %c0_27] : memref<2x8xf32, #tpu.memory_space<vmem>>, vector<1x8xf32>
    %cst_28 = arith.constant 9.99999974E-6 : f32
    %45 = vector.broadcast %cst_28 : f32 to vector<1x8xf32>
    %46 = arith.addf %43, %45 : vector<1x8xf32>
    %47 = math.rsqrt %46 : vector<1x8xf32>
    %48 = arith.mulf %44, %47 : vector<1x8xf32>
    %c1_29 = arith.constant 1 : index
    %c0_30 = arith.constant 0 : index
    %49 = vector.load %arg4[%c1_29, %c0_30] : memref<2x8xf32, #tpu.memory_space<vmem>>, vector<1x8xf32>
    %50 = arith.mulf %36, %48 : vector<1x8xf32>
    %51 = arith.subf %49, %50 : vector<1x8xf32>
    %52 = vector.shape_cast %6 : vector<2x1xi1> to vector<2x1xi1>
    %53 = vector.broadcast %52 : vector<2x1xi1> to vector<2x8xi1>
    %54 = vector.shape_cast %51 : vector<1x8xf32> to vector<1x8xf32>
    %55 = vector.broadcast %54 : vector<1x8xf32> to vector<2x8xf32>
    %56 = vector.shape_cast %48 : vector<1x8xf32> to vector<1x8xf32>
    %57 = vector.broadcast %56 : vector<1x8xf32> to vector<2x8xf32>
    %58 = arith.select %53, %55, %57 : vector<2x8xi1>, vector<2x8xf32>
    %cst_31 = arith.constant dense<0.000000e+00> : vector<2x128xf32>
    %59 = tpu.matmul %58, %1, %cst_31 {dimension_numbers = #tpu.dot_dimension_numbers<[1], [0], [0], [1], [0, 0, 1, 1], [], []>} : vector<2x8xf32>, vector<8x128xf32>, vector<2x128xf32> -> vector<2x128xf32>
    %60 = vector.extract_strided_slice %59 {offsets = [0, 0], sizes = [1, 128], strides = [1, 1]} : vector<2x128xf32> to vector<1x128xf32>
    %61 = vector.broadcast %60 : vector<1x128xf32> to vector<32x128xf32>
    %62 = arith.mulf %20, %61 : vector<32x128xf32>
    %63 = vector.extract_strided_slice %59 {offsets = [1, 0], sizes = [1, 128], strides = [1, 1]} : vector<2x128xf32> to vector<1x128xf32>
    %64 = vector.broadcast %63 : vector<1x128xf32> to vector<32x128xf32>
    %65 = arith.addf %62, %64 : vector<32x128xf32>
    %cst_32 = arith.constant 0.000000e+00 : f32
    %66 = vector.broadcast %cst_32 : f32 to vector<32x128xf32>
    %67 = arith.maximumf %65, %66 : vector<32x128xf32>
    %68 = arith.truncf %67 : vector<32x128xf32> to vector<32x128xbf16>
    %c0_33 = arith.constant 0 : index
    %c0_34 = arith.constant 0 : index
    %c0_35 = arith.constant 0 : index
    %69 = vector.load %arg3[%c0_33, %c0_34, %c0_35] : memref<3x128x128xbf16, #tpu.memory_space<vmem>>, vector<1x128x128xbf16>
    %70 = vector.shape_cast %69 : vector<1x128x128xbf16> to vector<128x128xbf16>
    %cst_36 = arith.constant dense<0.000000e+00> : vector<32x128xf32>
    %71 = tpu.matmul %68, %70, %cst_36 {dimension_numbers = #tpu.dot_dimension_numbers<[1], [0], [0], [1], [0, 0, 1, 1], [], []>} : vector<32x128xbf16>, vector<128x128xbf16>, vector<32x128xf32> -> vector<32x128xf32>
    %c1_37 = arith.constant 1 : index
    %c0_38 = arith.constant 0 : index
    %c0_39 = arith.constant 0 : index
    %72 = vector.load %arg3[%c1_37, %c0_38, %c0_39] : memref<3x128x128xbf16, #tpu.memory_space<vmem>>, vector<1x128x128xbf16>
    %73 = vector.shape_cast %72 : vector<1x128x128xbf16> to vector<128x128xbf16>
    %cst_40 = arith.constant dense<0.000000e+00> : vector<32x128xf32>
    %74 = tpu.matmul %68, %73, %cst_40 {dimension_numbers = #tpu.dot_dimension_numbers<[1], [0], [0], [1], [0, 0, 1, 1], [], []>} : vector<32x128xbf16>, vector<128x128xbf16>, vector<32x128xf32> -> vector<32x128xf32>
    %c2_41 = arith.constant 2 : index
    %c0_42 = arith.constant 0 : index
    %c0_43 = arith.constant 0 : index
    %75 = vector.load %arg3[%c2_41, %c0_42, %c0_43] : memref<3x128x128xbf16, #tpu.memory_space<vmem>>, vector<1x128x128xbf16>
    %76 = vector.shape_cast %75 : vector<1x128x128xbf16> to vector<128x128xbf16>
    %cst_44 = arith.constant dense<0.000000e+00> : vector<32x128xf32>
    %77 = tpu.matmul %68, %76, %cst_44 {dimension_numbers = #tpu.dot_dimension_numbers<[1], [0], [0], [1], [0, 0, 1, 1], [], []>} : vector<32x128xbf16>, vector<128x128xbf16>, vector<32x128xf32> -> vector<32x128xf32>
    %cst_45 = arith.constant dense<0.000000e+00> : vector<32x128xf32>
    %78 = tpu.matmul %2, %71, %cst_45 {dimension_numbers = #tpu.dot_dimension_numbers<[1], [0], [0], [1], [0, 0, 1, 1], [], []>} : vector<32x32xf32>, vector<32x128xf32>, vector<32x128xf32> -> vector<32x128xf32>
    %79 = arith.addf %78, %74 : vector<32x128xf32>
    %cst_46 = arith.constant dense<0.000000e+00> : vector<32x128xf32>
    %80 = tpu.matmul %3, %77, %cst_46 {dimension_numbers = #tpu.dot_dimension_numbers<[1], [0], [0], [1], [0, 0, 1, 1], [], []>} : vector<32x32xf32>, vector<32x128xf32>, vector<32x128xf32> -> vector<32x128xf32>
    %81 = arith.addf %79, %80 : vector<32x128xf32>
    %cst_47 = arith.constant dense<0.000000e+00> : vector<128xf32>
    %82 = vector.multi_reduction <add>, %81, %cst_47 [0] : vector<32x128xf32> to vector<128xf32>
    %83 = vector.shape_cast %82 : vector<128xf32> to vector<1x128xf32>
    %84 = arith.mulf %81, %81 : vector<32x128xf32>
    %cst_48 = arith.constant dense<0.000000e+00> : vector<128xf32>
    %85 = vector.multi_reduction <add>, %84, %cst_48 [0] : vector<32x128xf32> to vector<128xf32>
    %86 = vector.shape_cast %85 : vector<128xf32> to vector<1x128xf32>
    %87 = vector.shape_cast %6 : vector<2x1xi1> to vector<2x1xi1>
    %88 = vector.broadcast %87 : vector<2x1xi1> to vector<2x128xi1>
    %89 = vector.shape_cast %86 : vector<1x128xf32> to vector<1x128xf32>
    %90 = vector.broadcast %89 : vector<1x128xf32> to vector<2x128xf32>
    %91 = vector.shape_cast %83 : vector<1x128xf32> to vector<1x128xf32>
    %92 = vector.broadcast %91 : vector<1x128xf32> to vector<2x128xf32>
    %93 = arith.select %88, %90, %92 : vector<2x128xi1>, vector<2x128xf32>
    %cst_49 = arith.constant dense<0.000000e+00> : vector<2x8xf32>
    %94 = tpu.matmul %93, %0, %cst_49 {dimension_numbers = #tpu.dot_dimension_numbers<[1], [0], [0], [1], [0, 0, 1, 1], [], []>} : vector<2x128xf32>, vector<128x8xf32>, vector<2x8xf32> -> vector<2x8xf32>
    %95 = vector.extract_strided_slice %94 {offsets = [0, 0], sizes = [1, 8], strides = [1, 1]} : vector<2x8xf32> to vector<1x8xf32>
    %cst_50 = arith.constant 0.001953125 : f32
    %96 = vector.broadcast %cst_50 : f32 to vector<1x8xf32>
    %97 = arith.mulf %95, %96 : vector<1x8xf32>
    %98 = vector.extract_strided_slice %94 {offsets = [1, 0], sizes = [1, 8], strides = [1, 1]} : vector<2x8xf32> to vector<1x8xf32>
    %cst_51 = arith.constant 0.001953125 : f32
    %99 = vector.broadcast %cst_51 : f32 to vector<1x8xf32>
    %100 = arith.mulf %98, %99 : vector<1x8xf32>
    %101 = arith.mulf %97, %97 : vector<1x8xf32>
    %102 = arith.subf %100, %101 : vector<1x8xf32>
    %cst_52 = arith.constant 0.000000e+00 : f32
    %103 = vector.broadcast %cst_52 : f32 to vector<1x8xf32>
    %104 = arith.maximumf %102, %103 : vector<1x8xf32>
    %c0_53 = arith.constant 0 : index
    %c0_54 = arith.constant 0 : index
    %105 = vector.load %arg5[%c0_53, %c0_54] : memref<2x8xf32, #tpu.memory_space<vmem>>, vector<1x8xf32>
    %cst_55 = arith.constant 9.99999974E-6 : f32
    %106 = vector.broadcast %cst_55 : f32 to vector<1x8xf32>
    %107 = arith.addf %104, %106 : vector<1x8xf32>
    %108 = math.rsqrt %107 : vector<1x8xf32>
    %109 = arith.mulf %105, %108 : vector<1x8xf32>
    %c1_56 = arith.constant 1 : index
    %c0_57 = arith.constant 0 : index
    %110 = vector.load %arg5[%c1_56, %c0_57] : memref<2x8xf32, #tpu.memory_space<vmem>>, vector<1x8xf32>
    %111 = arith.mulf %97, %109 : vector<1x8xf32>
    %112 = arith.subf %110, %111 : vector<1x8xf32>
    %113 = vector.shape_cast %6 : vector<2x1xi1> to vector<2x1xi1>
    %114 = vector.broadcast %113 : vector<2x1xi1> to vector<2x8xi1>
    %115 = vector.shape_cast %112 : vector<1x8xf32> to vector<1x8xf32>
    %116 = vector.broadcast %115 : vector<1x8xf32> to vector<2x8xf32>
    %117 = vector.shape_cast %109 : vector<1x8xf32> to vector<1x8xf32>
    %118 = vector.broadcast %117 : vector<1x8xf32> to vector<2x8xf32>
    %119 = arith.select %114, %116, %118 : vector<2x8xi1>, vector<2x8xf32>
    %cst_58 = arith.constant dense<0.000000e+00> : vector<2x128xf32>
    %120 = tpu.matmul %119, %1, %cst_58 {dimension_numbers = #tpu.dot_dimension_numbers<[1], [0], [0], [1], [0, 0, 1, 1], [], []>} : vector<2x8xf32>, vector<8x128xf32>, vector<2x128xf32> -> vector<2x128xf32>
    %121 = vector.extract_strided_slice %120 {offsets = [0, 0], sizes = [1, 128], strides = [1, 1]} : vector<2x128xf32> to vector<1x128xf32>
    %122 = vector.broadcast %121 : vector<1x128xf32> to vector<32x128xf32>
    %123 = arith.mulf %81, %122 : vector<32x128xf32>
    %124 = vector.extract_strided_slice %120 {offsets = [1, 0], sizes = [1, 128], strides = [1, 1]} : vector<2x128xf32> to vector<1x128xf32>
    %125 = vector.broadcast %124 : vector<1x128xf32> to vector<32x128xf32>
    %126 = arith.addf %123, %125 : vector<32x128xf32>
    %cst_59 = arith.constant 0.000000e+00 : f32
    %127 = vector.broadcast %cst_59 : f32 to vector<32x128xf32>
    %128 = arith.maximumf %126, %127 : vector<32x128xf32>
    %c0_60 = arith.constant 0 : index
    %c0_61 = arith.constant 0 : index
    %129 = vector.load %arg10[%c0_60, %c0_61] : memref<32x128xf32, #tpu.memory_space<vmem>>, vector<32x128xf32>
    tpu.vector_store %arg10[%c0_60, %c0_61], %128 {strides = array<i32>} : memref<32x128xf32, #tpu.memory_space<vmem>>, vector<32x128xf32>,
    return
  }
  func.func @transform_0(%arg0: i32) -> (i32, i32) {
    %c0_i32 = arith.constant 0 : i32
    %c0_i32_0 = arith.constant 0 : i32
    %c0_i32_1 = arith.constant 0 : i32
    return %c0_i32, %c0_i32_0 : i32, i32
  }
  func.func @transform_1(%arg0: i32) -> (i32, i32, i32) {
    %c0_i32 = arith.constant 0 : i32
    %c0_i32_0 = arith.constant 0 : i32
    %c0_i32_1 = arith.constant 0 : i32
    %c0_i32_2 = arith.constant 0 : i32
    return %c0_i32, %c0_i32_0, %c0_i32_1 : i32, i32, i32
  }
  func.func @transform_2(%arg0: i32) -> (i32, i32, i32) {
    %c0_i32 = arith.constant 0 : i32
    %c0_i32_0 = arith.constant 0 : i32
    %c0_i32_1 = arith.constant 0 : i32
    %c0_i32_2 = arith.constant 0 : i32
    return %c0_i32, %c0_i32_0, %c0_i32_1 : i32, i32, i32
  }
  func.func @transform_3(%arg0: i32) -> (i32, i32) {
    %c0_i32 = arith.constant 0 : i32
    %c0_i32_0 = arith.constant 0 : i32
    %c0_i32_1 = arith.constant 0 : i32
    return %c0_i32, %c0_i32_0 : i32, i32
  }
  func.func @transform_4(%arg0: i32) -> (i32, i32) {
    %c0_i32 = arith.constant 0 : i32
    %c0_i32_0 = arith.constant 0 : i32
    %c0_i32_1 = arith.constant 0 : i32
    return %c0_i32, %c0_i32_0 : i32, i32
  }
  func.func @transform_5(%arg0: i32) -> (i32, i32) {
    %c0_i32 = arith.constant 0 : i32
    %c0_i32_0 = arith.constant 0 : i32
    %c0_i32_1 = arith.constant 0 : i32
    return %c0_i32, %c0_i32_0 : i32, i32
  }
  func.func @transform_6(%arg0: i32) -> (i32, i32) {
    %c0_i32 = arith.constant 0 : i32
    %c0_i32_0 = arith.constant 0 : i32
    %c0_i32_1 = arith.constant 0 : i32
    return %c0_i32, %c0_i32_0 : i32, i32
  }
  func.func @transform_7(%arg0: i32) -> (i32, i32) {
    %c0_i32 = arith.constant 0 : i32
    %c0_i32_0 = arith.constant 0 : i32
    %c0_i32_1 = arith.constant 0 : i32
    return %c0_i32, %c0_i32_0 : i32, i32
  }
  func.func @transform_8(%arg0: i32) -> (i32, i32) {
    %c0_i32 = arith.constant 0 : i32
    %c0_i32_0 = arith.constant 0 : i32
    %c0_i32_1 = arith.constant 0 : i32
    return %c0_i32, %c0_i32_0 : i32, i32
  }
  func.func @transform_9(%arg0: i32) -> (i32, i32) {
    %c0_i32 = arith.constant 0 : i32
    %c0_i32_0 = arith.constant 0 : i32
    %c0_i32_1 = arith.constant 0 : i32
    return %c0_i32, %c0_i32_0 : i32, i32
  }
}

</mosaic_0001>

<bundles_post_ra>
// kernel: down_final_forward.1
= control target key start
LH: loop header
LB: loop body
LE: loop exit
PB: predicated region body
PF: predicated region fallthrough
CT: control target
= control target key end

     0   :  { %vm618_vm0 = vcmask 261120   ;;  %vm2424_vm1 = vmmov 0   ;;  %vm938_vm3 = vcmask 64512   ;;  %s3026_s1 = inlined_call_operand.vmem [shape: bf16[3,256,128], index: 1, kind: input, shape index: {}]   ;;  %s3027_s0 = inlined_call_operand.vmem [shape: bf16[32,256], index: 0, kind: input, shape index: {}]   ;;  %s3028_s7 = inlined_call_operand.vmem [shape: f32[32,32], index: 7, kind: input, shape index: {}]   ;;  %s3029_s8 = inlined_call_operand.vmem [shape: f32[32,32], index: 8, kind: input, shape index: {}]   ;;  %s3030_s5 = inlined_call_operand.vmem [shape: f32[128,8], index: 5, kind: input, shape index: {}]   ;;  %s3031_s6 = inlined_call_operand.vmem [shape: f32[8,128], index: 6, kind: input, shape index: {}]   ;;  %s3032_s2 = inlined_call_operand.vmem [shape: bf16[3,128,128], index: 2, kind: input, shape index: {}]   ;;  %s3033_s3 = inlined_call_operand.vmem [shape: f32[2,8], index: 3, kind: input, shape index: {}]   ;;  %s3034_s4 = inlined_call_operand.vmem [shape: f32[2,8], index: 4, kind: input, shape index: {}]   ;;  %s3035_s9 = inlined_call_operand.vmem [shape: f32[32,128], index: 9, kind: output, shape index: {}]  }
   0x1   :  { %v2341_v0 = vld [vmem:[%s3026_s1 + $0x78] sm:$0xff]   ;;  %v2343_v2 = vld [vmem:[%s3026_s1 + $0x70] sm:$0xff]   ;;  %v2345_v4 = vld [vmem:[%s3026_s1 + $0x68] sm:$0xff]  }
   0x2   :  { %v2342_v1 = vld [vmem:[%s3026_s1 + $0x38] sm:$0xff]   ;;  %1959 = vmatprep.subr.bf16.mxu0 %v2341_v0  ;;  %v2344_v3 = vld [vmem:[%s3026_s1 + $0x30] sm:$0xff]   ;;  %v2346_v5 = vld [vmem:[%s3026_s1 + $0x28] sm:$0xff]  }
   0x3   :  { %1960 = vmatpush3.bf16.msra.mxu0 %v2342_v1  ;;  %v2347_v6 = vld [vmem:[%s3026_s1 + $0x60] sm:$0xff]   ;;  %v2349_v8 = vld [vmem:[%s3026_s1 + $0x58] sm:$0xff]   ;;  %v2351_v10 = vld [vmem:[%s3026_s1 + $0x50] sm:$0xff]  }
   0x4   :  { %1961 = vmatprep.subr.bf16.mxu0 %v2343_v2  ;;  %v2348_v7 = vld [vmem:[%s3026_s1 + $0x20] sm:$0xff]   ;;  %v2350_v9 = vld [vmem:[%s3026_s1 + $0x18] sm:$0xff]   ;;  %v2352_v12 = vld [vmem:[%s3026_s1 + $0x10] sm:$0xff]  }
   0x5   :  { %v2357_v11 = vld [vmem:[%s3027_s0 + $0x4] ss:$8 sps:$4 sm:$0xff]   ;;  %v2360_v17 = vld [vmem:[%s3026_s1 + $0x178] sm:$0xff]   ;;  %v2532_v18 = vld [vmem:[%s3027_s0] ss:$8 sps:$4 sm:$0xff]  }
   0x6   :  { %245 = vmatprep.mubr.bf16.mxu0 %v2357_v11  ;;  %423 = vmatprep.mubr.bf16.mxu1 %v2357_v11  ;;  %v2353_v13 = vld [vmem:[%s3026_s1 + $0x48] sm:$0xff]   ;;  %v2355_v15 = vld [vmem:[%s3026_s1 + $0x40] sm:$0xff]   ;;  %v2361_v19 = vld [vmem:[%s3026_s1 + $0x138] sm:$0xff]  }
   0x7   :  { %1962 = vmatpush3.bf16.msra.mxu0 %v2344_v3  ;;  %v2354_v14 = vld [vmem:[%s3026_s1 + $0x8] sm:$0xff]   ;;  %v2356_v16 = vld [vmem:[%s3026_s1] sm:$0xff]   ;;  %v2540_v20 = vld [vmem:[%s3027_s0 + $0x14] ss:$8 sps:$4 sm:$0xff]  }
   0x8   :  { %1963 = vmatprep.subr.bf16.mxu0 %v2345_v4  ;;  %v2362_v21 = vld [vmem:[%s3026_s1 + $0x170] sm:$0xff]   ;;  %v2367_v23 = vld [vmem:[%s3026_s1 + $0x168] sm:$0xff]   ;;  %v2369_v26 = vld [vmem:[%s3026_s1 + $0x160] sm:$0xff]  }
   0x9   :  { %v2363_v22 = vld [vmem:[%s3026_s1 + $0x130] sm:$0xff]   ;;  %v2368_v25 = vld [vmem:[%s3026_s1 + $0x128] sm:$0xff]   ;;  %v2370_v27 = vld [vmem:[%s3026_s1 + $0x120] sm:$0xff]  }
   0xa   :  { %v2556_v24 = vld [vmem:[%s3027_s0 + $0x10] ss:$8 sps:$4 sm:$0xff]   ;;  %v2375_v32 = vld [vmem:[%s3026_s1 + $0x148] sm:$0xff]   ;;  %v2377_v34 = vld [vmem:[%s3026_s1 + $0x140] sm:$0xff]  }
   0xb   :  { %1964 = vmatpush3.bf16.msra.mxu0 %v2346_v5  ;;  %v2371_v28 = vld [vmem:[%s3026_s1 + $0x158] sm:$0xff]   ;;  %v2373_v30 = vld [vmem:[%s3026_s1 + $0x150] sm:$0xff]   ;;  %v2376_v33 = vld [vmem:[%s3026_s1 + $0x108] sm:$0xff]  }
   0xc   :  { %1965 = vmatprep.subr.bf16.mxu0 %v2347_v6  ;;  %v2372_v29 = vld [vmem:[%s3026_s1 + $0x118] sm:$0xff]   ;;  %v2374_v31 = vld [vmem:[%s3026_s1 + $0x110] sm:$0xff]   ;;  %v2378_v35 = vld [vmem:[%s3026_s1 + $0x100] sm:$0xff]  }
   0xd   :  { %v2379_v36 = vld [vmem:[%s3026_s1 + $0xf8] sm:$0xff]   ;;  %v2381_v38 = vld [vmem:[%s3026_s1 + $0xf0] sm:$0xff]   ;;  %v2383_v40 = vld [vmem:[%s3026_s1 + $0xe8] sm:$0xff]  }
   0xe   :  { %v2380_v37 = vld [vmem:[%s3026_s1 + $0xb8] sm:$0xff]   ;;  %1987 = vmatprep.subr.bf16.mxu1 %v2379_v36  ;;  %v2382_v39 = vld [vmem:[%s3026_s1 + $0xb0] sm:$0xff]   ;;  %v2384_v41 = vld [vmem:[%s3026_s1 + $0xa8] sm:$0xff]  }
   0xf   :  { %1966 = vmatpush3.bf16.msra.mxu0 %v2348_v7  ;;  %1988 = vmatpush3.bf16.msra.mxu1 %v2380_v37  ;;  %v2385_v42 = vld [vmem:[%s3026_s1 + $0xe0] sm:$0xff]   ;;  %v2387_v44 = vld [vmem:[%s3026_s1 + $0xd8] sm:$0xff]   ;;  %v2389_v46 = vld [vmem:[%s3026_s1 + $0xd0] sm:$0xff]  }
  0x10   :  { %1967 = vmatprep.subr.bf16.mxu0 %v2349_v8  ;;  %1989 = vmatprep.subr.bf16.mxu1 %v2381_v38  ;;  %v2386_v43 = vld [vmem:[%s3026_s1 + $0xa0] sm:$0xff]   ;;  %v2388_v45 = vld [vmem:[%s3026_s1 + $0x98] sm:$0xff]   ;;  %v2390_v47 = vld [vmem:[%s3026_s1 + $0x90] sm:$0xff]  }
  0x11   :  { %v2391_v48 = vld [vmem:[%s3026_s1 + $0xc8] sm:$0xff]   ;;  %v2393_v50 = vld [vmem:[%s3026_s1 + $0xc0] sm:$0xff]   ;;  %v2668_v3 = vld [vmem:[%s3028_s7 + $0x10] sm:$0xff] }
  0x12   :  { %v2392_v49 = vld [vmem:[%s3026_s1 + $0x88] sm:$0xff]   ;;  %v2394_v51 = vld [vmem:[%s3026_s1 + $0x80] sm:$0xff]   ;;  %v2677_v4 = vld [vmem:[%s3028_s7 + $0x18] sm:$0xff] }
  0x13   :  { %1968 = vmatpush3.bf16.msra.mxu0 %v2350_v9  ;;  %1990 = vmatpush3.bf16.msra.mxu1 %v2382_v39  ;;  %v2648_v52 = vld [vmem:[%s3028_s7] sm:$0xff]  ;;  %v2663_v2 = vld [vmem:[%s3028_s7 + $0x8] sm:$0xff] }
  0x14   :  { %1969 = vmatprep.subr.bf16.mxu0 %v2351_v10  ;;  %1991 = vmatprep.subr.bf16.mxu1 %v2383_v40  ;;  %v2656_v53 = vld [vmem:[%s3029_s8] sm:$0xff] }
  0x15   :  { %v2814_v36 = vld [vmem:[%s3030_s5] sm:$0xff] }
  0x17   :  { %1970 = vmatpush3.bf16.msra.mxu0 %v2352_v12  ;;  %1992 = vmatpush3.bf16.msra.mxu1 %v2384_v41 }
  0x18   :  { %1971 = vmatprep.subr.bf16.mxu0 %v2353_v13  ;;  %1993 = vmatprep.subr.bf16.mxu1 %v2385_v42 }
  0x1b   :  { %1972 = vmatpush3.bf16.msra.mxu0 %v2354_v14  ;;  %1994 = vmatpush3.bf16.msra.mxu1 %v2386_v43 }
  0x1c   :  { %1973 = vmatprep.subr.bf16.mxu0 %v2355_v15  ;;  %1995 = vmatprep.subr.bf16.mxu1 %v2387_v44 }
  0x1f   :  { %1974 = vmatpush3.bf16.msra.mxu0 %v2356_v16  ;;  %1996 = vmatpush3.bf16.msra.mxu1 %v2388_v45 }
  0x20   :  { %2015 = vmatprep.subr.bf16.mxu0 %v2360_v17  ;;  %1997 = vmatprep.subr.bf16.mxu1 %v2389_v46  ;;  %v2684_v17 = vld [vmem:[%s3029_s8 + $0x8] sm:$0xff] }
  0x22   :  { %246 = vmatmul.mubr.bf16.vlgmr.msra.gmra.mxu0 %v2532_v18 }
  0x23   :  { %2016 = vmatpush3.bf16.msra.mxu0 %v2361_v19  ;;  %253 = vmatprep.mubr.bf16.mxu0 %v2540_v20  ;;  %v2698_v19 = vld [vmem:[%s3029_s8 + $0x18] sm:$0xff] }
  0x24   :  { %2017 = vmatprep.subr.bf16.mxu0 %v2362_v21  ;;  %1998 = vmatpush3.bf16.msra.mxu1 %v2390_v47  ;;  %v2706_v21 = vld [vmem:[%s3030_s5 + $0x78] sm:$0xff] }
  0x25   :  { %1999 = vmatprep.subr.bf16.mxu1 %v2391_v48 }
  0x27   :  { %2018 = vmatpush3.bf16.msra.mxu0 %v2363_v22  ;;  %v2711_v22 = vld [vmem:[%s3030_s5 + $0x70] sm:$0xff] }
  0x28   :  { %2019 = vmatprep.subr.bf16.mxu0 %v2367_v23  ;;  %2000 = vmatpush3.bf16.msra.mxu1 %v2392_v49  ;;  %v2721_v23 = vld [vmem:[%s3030_s5 + $0x68] sm:$0xff] }
  0x29   :  { %2001 = vmatprep.subr.bf16.mxu1 %v2393_v50 }
  0x2a   :  { %254 = vmatmul.mubr.bf16.gmra.mxu0 %v2556_v24 }
  0x2b   :  { %2020 = vmatpush3.bf16.msra.mxu0 %v2368_v25  ;;  %601 = vmatprep.mubr.bf16.mxu0 %v2357_v11  ;;  %v2735_v25 = vld [vmem:[%s3030_s5 + $0x58] sm:$0xff] }
  0x2c   :  { %2021 = vmatprep.subr.bf16.mxu0 %v2369_v26  ;;  %2002 = vmatpush3.bf16.msra.mxu1 %v2394_v51  ;;  %v2742_v26 = vld [vmem:[%s3030_s5 + $0x50] sm:$0xff] }
  0x2f   :  { %2022 = vmatpush3.bf16.msra.mxu0 %v2370_v27  ;;  %424 = vmatmul.mubr.bf16.vlgmr.msra.gmra.mxu1 %v2532_v18  ;;  %v2749_v27 = vld [vmem:[%s3030_s5 + $0x48] sm:$0xff] }
  0x30   :  { %2023 = vmatprep.subr.bf16.mxu0 %v2371_v28  ;;  %431 = vmatprep.mubr.bf16.mxu1 %v2540_v20  ;;  %v2756_v28 = vld [vmem:[%s3030_s5 + $0x40] sm:$0xff] }
  0x33   :  { %2024 = vmatpush3.bf16.msra.mxu0 %v2372_v29  ;;  %v2763_v29 = vld [vmem:[%s3030_s5 + $0x38] sm:$0xff] }
  0x34   :  { %2025 = vmatprep.subr.bf16.mxu0 %v2373_v30  ;;  %v2770_v30 = vld [vmem:[%s3030_s5 + $0x30] sm:$0xff] }
  0x37   :  { %2026 = vmatpush3.bf16.msra.mxu0 %v2374_v31  ;;  %432 = vmatmul.mubr.bf16.gmra.mxu1 %v2556_v24  ;;  %v2777_v31 = vld [vmem:[%s3030_s5 + $0x28] sm:$0xff] }
  0x38   :  { %2027 = vmatprep.subr.bf16.mxu0 %v2375_v32  ;;  %2165 = vmatprep.mubr.msk.f32.mxu1 %vm618_vm0, %v2656_v53  ;;  %v2784_v32 = vld [vmem:[%s3030_s5 + $0x20] sm:$0xff] }
  0x3b   :  { %2028 = vmatpush3.bf16.msra.mxu0 %v2376_v33  ;;  %v2790_v33 = vld [vmem:[%s3030_s5 + $0x18] sm:$0xff] }
  0x3c   :  { %2029 = vmatprep.subr.bf16.mxu0 %v2377_v34  ;;  %v2796_v34 = vld [vmem:[%s3030_s5 + $0x10] sm:$0xff] }
  0x3f   :  { %2030 = vmatpush3.bf16.msra.mxu0 %v2378_v35  ;;  %v2807_v35 = vld [vmem:[%s3030_s5 + $0x8] sm:$0xff] }
  0x42   :  { %602 = vmatmul.mubr.bf16.vlgmr.msra.gmra.mxu0 %v2532_v18  ;;  %v2689_v18 = vld [vmem:[%s3029_s8 + $0x10] sm:$0xff] }
  0x43   :  { %609 = vmatprep.mubr.bf16.mxu0 %v2540_v20  ;;  %v2423_v20 = vmov 0.0  }
  0x4a   :  { %610 = vmatmul.mubr.bf16.gmra.mxu0 %v2556_v24  ;;  %v2728_v24 = vld [vmem:[%s3030_s5 + $0x60] sm:$0xff] }
  0x4b   :  { %2151 = vmatprep.mubr.msk.f32.mxu0 %vm618_vm0, %v2648_v52 }
  0xe2   :  { %v1975_v54 = vpop.f32.mrf.mxu0 }
  0xe4   :  { %v1976_v55 = vpop.f32.mrf.mxu0 }
  0xe5   :  { %v1977_v1 = vadd.f32 %v1976_v55, %v1975_v54 }
  0xe6   :  { %v1978_v56 = vpop.f32.mrf.mxu0 }
  0xe8   :  { %v1979_v57 = vpop.f32.mrf.mxu0 }
  0xe9   :  { %v1980_v0 = vadd.f32 %v1979_v57, %v1978_v56 }
  0xea   :  { %v1981_v58 = vpop.f32.mrf.mxu0 }
  0xec   :  { %v1982_v59 = vpop.f32.mrf.mxu0 }
  0xed   :  { %v1983_v62 = vadd.f32 %v1982_v59, %v1981_v58 }
  0xee   :  { %v1984_v60 = vpop.f32.mrf.mxu0 }
  0xef   :  { %v2003_v37 = vpop.f32.mrf.mxu1 }
  0xf0   :  { %v1985_v61 = vpop.f32.mrf.mxu0 }
  0xf1   :  { %v1986_v63 = vadd.f32 %v1985_v61, %v1984_v60  ;;  %v2004_v38 = vpop.f32.mrf.mxu1 }
  0xf2   :  { %v2005_v46 = vadd.f32 %v2004_v38, %v2003_v37 }
  0xf3   :  { %2143 = vmatprep.subr.mxu0 %v1986_v63  ;;  %v2006_v39 = vpop.f32.mrf.mxu1 }
  0xf4   :  { %2144 = vmatpush3.msra.mxu0 %v1986_v63 }
  0xf5   :  { %2145 = vmatprep.subr.mxu0 %v1983_v62  ;;  %v2007_v40 = vpop.f32.mrf.mxu1 }
  0xf6   :  { %2146 = vmatpush3.msra.mxu0 %v1983_v62  ;;  %v2008_v47 = vadd.f32 %v2007_v40, %v2006_v39  ;;  %v58_v39 = vlaneseq }
  0xf7   :  { %2147 = vmatprep.subr.mxu0 %v1980_v0  ;;  %v2009_v41 = vpop.f32.mrf.mxu1 }
  0xf8   :  { %2148 = vmatpush3.msra.mxu0 %v1980_v0 }
  0xf9   :  { %2149 = vmatprep.subr.mxu0 %v1977_v1  ;;  %v2010_v42 = vpop.f32.mrf.mxu1 }
  0xfa   :  { %2150 = vmatpush3.msra.mxu0 %v1977_v1  ;;  %v2011_v54 = vadd.f32 %v2010_v42, %v2009_v41 }
  0xfb   :  { %2152 = vmatmul.mubr.msk.f32.vlgmr.msra.gmra.mxu0 %vm618_vm0, %v2663_v2  ;;  %2206 = vmatprep.subr.mxu0 %v2423_v20  ;;  %v2012_v44 = vpop.f32.mrf.mxu1 }
  0xfc   :  { %2154 = vmatprep.mubr.msk.f32.mxu0 %vm618_vm0, %v2668_v3 }
  0xfd   :  { %v2013_v48 = vpop.f32.mrf.mxu1 }
  0xfe   :  { %v2014_v56 = vadd.f32 %v2013_v48, %v2012_v44  ;;  %v2839_v44 = vshrl.u32 %v58_v39, 7 }
  0xff   :  { %2155 = vmatmul.mubr.msk.f32.gmra.mxu0 %vm618_vm0, %v2677_v4 }
 0x100   :  { %2208 = vmatprep.mubr.msk.f32.mxu0 %vm2424_vm1, %v2423_v20  ;;  %vm60_vm2 = vcmp.eq.s32.totalorder %v2839_v44, 1 }
 0x102   :  { %v2031_v5 = vpop.f32.mrf.mxu0 }
 0x104   :  { %v2032_v6 = vpop.f32.mrf.mxu0 }
 0x105   :  { %v2033_v16 = vadd.f32 %v2032_v6, %v2031_v5 }
 0x106   :  { %v2034_v7 = vpop.f32.mrf.mxu0 }
 0x108   :  { %v2035_v8 = vpop.f32.mrf.mxu0 }
 0x109   :  { %v2036_v15 = vadd.f32 %v2035_v8, %v2034_v7 }
 0x10a   :  { %v2037_v9 = vpop.f32.mrf.mxu0 }
 0x10c   :  { %v2038_v10 = vpop.f32.mrf.mxu0 }
 0x10d   :  { %v2039_v14 = vadd.f32 %v2038_v10, %v2037_v9 }
 0x10e   :  { %v2040_v11 = vpop.f32.mrf.mxu0 }
 0x110   :  { %v2041_v12 = vpop.f32.mrf.mxu0 }
 0x111   :  { %v2042_v13 = vadd.f32 %v2041_v12, %v2040_v11 }
 0x113   :  { %2157 = vmatprep.subr.mxu1 %v2042_v13 }
 0x114   :  { %2158 = vmatpush3.msra.mxu1 %v2042_v13 }
 0x115   :  { %2159 = vmatprep.subr.mxu1 %v2039_v14 }
 0x116   :  { %2160 = vmatpush3.msra.mxu1 %v2039_v14 }
 0x117   :  { %2161 = vmatprep.subr.mxu1 %v2036_v15 }
 0x118   :  { %2162 = vmatpush3.msra.mxu1 %v2036_v15 }
 0x119   :  { %2163 = vmatprep.subr.mxu1 %v2033_v16 }
 0x11a   :  { %2164 = vmatpush3.msra.mxu1 %v2033_v16 }
 0x11b   :  { %2166 = vmatmul.mubr.msk.f32.vlgmr.msra.gmra.mxu1 %vm618_vm0, %v2684_v17  ;;  %2171 = vmatprep.subr.mxu1 %v2423_v20 }
 0x11c   :  { %2168 = vmatprep.mubr.msk.f32.mxu1 %vm618_vm0, %v2689_v18  ;;  %2172 = vmatpush3.msra.mxu1 %v2706_v21 }
 0x11d   :  { %2173 = vmatprep.subr.mxu1 %v2423_v20 }
 0x11e   :  { %2174 = vmatpush3.msra.mxu1 %v2711_v22 }
 0x11f   :  { %2169 = vmatmul.mubr.msk.f32.gmra.mxu1 %vm618_vm0, %v2698_v19  ;;  %2175 = vmatprep.subr.mxu1 %v2423_v20 }
 0x120   :  { %2176 = vmatpush3.msra.mxu1 %v2721_v23  ;;  %2203 = vmatprep.mubr.msk.f32.mxu1 %vm2424_vm1, %v2423_v20 }
 0x121   :  { %2177 = vmatprep.subr.mxu1 %v2423_v20 }
 0x122   :  { %2178 = vmatpush3.msra.mxu1 %v2728_v24 }
 0x123   :  { %2179 = vmatprep.subr.mxu1 %v2423_v20 }
 0x124   :  { %2180 = vmatpush3.msra.mxu1 %v2735_v25 }
 0x125   :  { %2181 = vmatprep.subr.mxu1 %v2423_v20 }
 0x126   :  { %2182 = vmatpush3.msra.mxu1 %v2742_v26 }
 0x127   :  { %2183 = vmatprep.subr.mxu1 %v2423_v20 }
 0x128   :  { %2184 = vmatpush3.msra.mxu1 %v2749_v27 }
 0x129   :  { %2185 = vmatprep.subr.mxu1 %v2423_v20 }
 0x12a   :  { %2186 = vmatpush3.msra.mxu1 %v2756_v28 }
 0x12b   :  { %2187 = vmatprep.subr.mxu1 %v2423_v20 }
 0x12c   :  { %2188 = vmatpush3.msra.mxu1 %v2763_v29 }
 0x12d   :  { %2189 = vmatprep.subr.mxu1 %v2423_v20 }
 0x12e   :  { %2190 = vmatpush3.msra.mxu1 %v2770_v30 }
 0x12f   :  { %2191 = vmatprep.subr.mxu1 %v2423_v20 }
 0x130   :  { %2192 = vmatpush3.msra.mxu1 %v2777_v31 }
 0x131   :  { %2193 = vmatprep.subr.mxu1 %v2423_v20 }
 0x132   :  { %2194 = vmatpush3.msra.mxu1 %v2784_v32 }
 0x133   :  { %2195 = vmatprep.subr.mxu1 %v2423_v20 }
 0x134   :  { %2196 = vmatpush3.msra.mxu1 %v2790_v33 }
 0x135   :  { %2197 = vmatprep.subr.mxu1 %v2423_v20 }
 0x136   :  { %2198 = vmatpush3.msra.mxu1 %v2796_v34 }
 0x137   :  { %2199 = vmatprep.subr.mxu1 %v2423_v20 }
 0x138   :  { %2200 = vmatpush3.msra.mxu1 %v2807_v35 }
 0x139   :  { %2201 = vmatprep.subr.mxu1 %v2423_v20 }
 0x13a   :  { %2202 = vmatpush3.msra.mxu1 %v2814_v36 }
 0x1bb   :  { %v2153_v43 = vpop.f32.mrf.mxu0 }
 0x1bc   :  { %v703_v51 = vadd.f32 %v2153_v43, %v2008_v47 }
 0x1bd   :  { %v697_v45 = vpop.f32.mrf.mxu0 }
 0x1be   :  { %v698_v55 = vadd.f32 %v2005_v46, %v697_v45 }
 0x1bf   :  { %v2156_v49 = vpop.f32.mrf.mxu0 }
 0x1c0   :  { %v713_v62 = vadd.f32 %v2156_v49, %v2014_v56  ;;  %v2398_v56 = vld [vmem:[%s3032_s2 + $0x70] sm:$0xff]  }
 0x1c1   :  { %v707_v57 = vpop.f32.mrf.mxu0 }
 0x1c2   :  { %v708_v63 = vadd.f32 %v2011_v54, %v707_v57  ;;  %v2395_v54 = vld [vmem:[%s3032_s2 + $0x38] sm:$0xff]   ;;  %v2400_v57 = vld [vmem:[%s3032_s2 + $0x68] sm:$0xff]  }
 0x1db   :  { %v2167_v50 = vpop.f32.mrf.mxu1 }
 0x1dc   :  { %v2819_v59 = vadd.f32 %v2167_v50, %v703_v51  ;;  %v2847_v51 = vld [vmem:[%s3031_s6] sm:$0xff] }
 0x1dd   :  { %v794_v58 = vpop.f32.mrf.mxu1  ;;  %2207 = vmatpush3.msra.mxu0 %v2847_v51 }
 0x1de   :  { %v2821_v60 = vadd.f32 %v794_v58, %v698_v55  ;;  %v827_v5 = vmul.f32 %v2819_v59, %v2819_v59  ;;  %v2396_v55 = vld [vmem:[%s3032_s2 + $0x78] sm:$0xff]   ;;  %2211 = vmatprep.subr.bf16.mxu0 %v2395_v54  ;;  %v2402_v58 = vld [vmem:[%s3032_s2 + $0x60] sm:$0xff]  }
 0x1df   :  { %v2170_v61 = vpop.f32.mrf.mxu1  ;;  %2231 = vmatprep.subr.bf16.mxu1 %v2396_v55 }
 0x1e0   :  { %v826_v0 = vmul.f32 %v2821_v60, %v2821_v60  ;;  %v817_v6 = vadd.f32 %v2819_v59, %v2821_v60  ;;  %v2829_v7 = vadd.f32 %v2170_v61, %v713_v62  ;;  %v2404_v61 = vld [vmem:[%s3032_s2 + $0x58] sm:$0xff]  }
 0x1e1   :  { %v804_v1 = vpop.f32.mrf.mxu1 }
 0x1e2   :  { %v2831_v8 = vadd.f32 %v804_v1, %v708_v63  ;;  %v830_v9 = vadd.f32 %v827_v5, %v826_v0  ;;  %v829_v12 = vmul.f32 %v2829_v7, %v2829_v7 }
 0x1e4   :  { %v818_v10 = vadd.f32 %v817_v6, %v2831_v8  ;;  %v828_v11 = vmul.f32 %v2831_v8, %v2831_v8 }
 0x1e6   :  { %v819_v13 = vadd.f32 %v818_v10, %v2829_v7  ;;  %v831_v14 = vadd.f32 %v830_v9, %v828_v11 }
 0x1e8   :  { %v820_v15 = vrot.slane %v819_v13, 4  ;;  %v832_v16 = vadd.f32 %v831_v14, %v829_v12  ;;  %v919_v12 = vld [vmem:[%s3033_s3] sm:$0x1] }
 0x1ea   :  { %v821_v37 = vadd.f32 %v820_v15, %v819_v13  ;;  %v833_v38 = vrot.slane %v832_v16, 4  ;;  %v926_v15 = vld [vmem:[%s3033_s3 + $0x1] sm:$0x1] }
 0x1ec   :  { %v822_v40 = vrot.slane %v821_v37, 2  ;;  %v834_v41 = vadd.f32 %v833_v38, %v832_v16  ;;  %v2875_v16 = vsub.s32 0, %v2839_v44 }
 0x1ee   :  { %v823_v42 = vadd.f32 %v822_v40, %v821_v37  ;;  %v835_v43 = vrot.slane %v834_v41, 2 }
 0x1f0   :  { %v824_v45 = vrot.slane %v823_v42, 1  ;;  %v836_v46 = vadd.f32 %v835_v43, %v834_v41  ;;  %v2397_v41 = vld [vmem:[%s3032_s2 + $0x30] sm:$0xff]   ;;  %v2399_v43 = vld [vmem:[%s3032_s2 + $0x28] sm:$0xff]  }
 0x1f2   :  { %v837_v47 = vrot.slane %v836_v46, 1  ;;  %v825_v48 = vadd.f32 %v824_v45, %v823_v42  ;;  %v2401_v45 = vld [vmem:[%s3032_s2 + $0x20] sm:$0xff]  }
 0x1f4   :  { %v838_v49 = vadd.f32 %v837_v47, %v836_v46  ;;  %v2403_v46 = vld [vmem:[%s3032_s2 + $0x18] sm:$0xff]   ;;  %v2405_v47 = vld [vmem:[%s3032_s2 + $0x10] sm:$0xff]  }
 0x1f6   :  { %v841_v50 = vsel %vm60_vm2, %v838_v49, %v825_v48  ;;  %v2406_v48 = vld [vmem:[%s3032_s2 + $0x50] sm:$0xff]   ;;  %v2407_v49 = vld [vmem:[%s3032_s2 + $0x8] sm:$0xff]  }
 0x1f7   :  { %2204 = vmatmul.mubr.f32.vlgmr.msra.gmra.mxu1 %v841_v50  ;;  %v2408_v50 = vld [vmem:[%s3032_s2 + $0x48] sm:$0xff]  }
 0x1f8   :  { %2232 = vmatpush3.bf16.msra.mxu1 %v2396_v55  ;;  %v2410_v55 = vld [vmem:[%s3032_s2 + $0x40] sm:$0xff]  }
 0x1f9   :  { %2233 = vmatprep.subr.bf16.mxu1 %v2398_v56 }
 0x1fc   :  { %2234 = vmatpush3.bf16.msra.mxu1 %v2398_v56  ;;  %v2411_v56 = vld [vmem:[%s3032_s2 + $0xb8] sm:$0xff]  }
 0x1fd   :  { %2235 = vmatprep.subr.bf16.mxu1 %v2400_v57 }
 0x200   :  { %2236 = vmatpush3.bf16.msra.mxu1 %v2400_v57  ;;  %v1022_v57 = vsub.s32 1, %v2839_v44 }
 0x201   :  { %2237 = vmatprep.subr.bf16.mxu1 %v2402_v58 }
 0x204   :  { %2238 = vmatpush3.bf16.msra.mxu1 %v2402_v58 }
 0x205   :  { %2239 = vmatprep.subr.bf16.mxu1 %v2404_v61 }
 0x208   :  { %2240 = vmatpush3.bf16.msra.mxu1 %v2404_v61 }
 0x209   :  { %2241 = vmatprep.subr.bf16.mxu1 %v2406_v48 }
 0x20c   :  { %2242 = vmatpush3.bf16.msra.mxu1 %v2406_v48 }
 0x20d   :  { %2243 = vmatprep.subr.bf16.mxu1 %v2408_v50 }
 0x210   :  { %2244 = vmatpush3.bf16.msra.mxu1 %v2408_v50 }
 0x211   :  { %2245 = vmatprep.subr.bf16.mxu1 %v2410_v55 }
 0x214   :  { %2246 = vmatpush3.bf16.msra.mxu1 %v2410_v55 }
 0x2b7   :  { %v908_v62 = vpop.f32.mrf.mxu1 }
 0x2b8   :  { %v912_v63 = vmul.f32 0.001953125, %v908_v62 }
 0x2b9   :  { %v2205_v0 = vpop.f32.mrf.mxu1 }
 0x2ba   :  { %v913_v1 = vmul.f32 %v912_v63, %v912_v63 }
 0x2bc   :  { %v915_v5 = vrot.slane %v913_v1, 7 }
 0x2be   :  { %v917_v6 = vsub.f32 %v912_v63, %v915_v5 }
 0x2c0   :  { %v918_v9 = vmax.f32 %v917_v6, 0.0 }
 0x2c2   :  { %v920_v10 = vadd.f32 1e-05, %v918_v9 }
 0x2c4   :  { %2419 = vrsqrt.f32 %v920_v10 }
 0x2d1   :  { %v2420_v11 = vpop.eup %2419 }
 0x2d2   :  { %v923_v13 = vrot.slane %v2420_v11, 1 }
 0x2d4   :  { %v925_v14 = vmul.f32 %v923_v13, %v919_v12 }
 0x2d6   :  { %v927_v37 = vmul.f32 %v925_v14, %v912_v63  ;;  %v936_v40 = vrot.slane %v925_v14, %v2875_v16 }
 0x2d8   :  { %v928_v38 = vsub.f32 %v926_v15, %v927_v37 }
 0x2da   :  { %v932_v39 = vrot.slane %v928_v38, %v2875_v16 }
 0x2dc   :  { %v937_v42 = vsel %vm60_vm2, %v932_v39, %v936_v40  ;;  %v2416_v40 = vld [vmem:[%s3032_s2 + $0x90] sm:$0xff]  }
 0x2dd   :  { %2209 = vmatmul.mubr.msk.f32.vlgmr.msra.gmra.mxu0 %vm938_vm3, %v937_v42 }
 0x2de   :  { %2212 = vmatpush3.bf16.msra.mxu0 %v2395_v54  ;;  %v2409_v54 = vld [vmem:[%s3032_s2] sm:$0xff]  }
 0x2df   :  { %2213 = vmatprep.subr.bf16.mxu0 %v2397_v41 }
 0x2e2   :  { %2214 = vmatpush3.bf16.msra.mxu0 %v2397_v41  ;;  %v2418_v41 = vld [vmem:[%s3032_s2 + $0x80] sm:$0xff]  }
 0x2e3   :  { %2215 = vmatprep.subr.bf16.mxu0 %v2399_v43 }
 0x2e6   :  { %2216 = vmatpush3.bf16.msra.mxu0 %v2399_v43 }
 0x2e7   :  { %2217 = vmatprep.subr.bf16.mxu0 %v2401_v45 }
 0x2ea   :  { %2218 = vmatpush3.bf16.msra.mxu0 %v2401_v45 }
 0x2eb   :  { %2219 = vmatprep.subr.bf16.mxu0 %v2403_v46 }
 0x2ee   :  { %2220 = vmatpush3.bf16.msra.mxu0 %v2403_v46 }
 0x2ef   :  { %2221 = vmatprep.subr.bf16.mxu0 %v2405_v47 }
 0x2f2   :  { %2222 = vmatpush3.bf16.msra.mxu0 %v2405_v47 }
 0x2f3   :  { %2223 = vmatprep.subr.bf16.mxu0 %v2407_v49 }
 0x2f6   :  { %2224 = vmatpush3.bf16.msra.mxu0 %v2407_v49 }
 0x2f7   :  { %2225 = vmatprep.subr.bf16.mxu0 %v2409_v54 }
 0x2fa   :  { %2226 = vmatpush3.bf16.msra.mxu0 %v2409_v54 }
 0x2fb   :  { %2251 = vmatprep.subr.bf16.mxu0 %v2411_v56 }
 0x39d   :  { %v1008_v58 = vpop.f32.mrf.mxu0 }
 0x39e   :  { %v1015_v61 = vrot.slane %v1008_v58, %v2875_v16  ;;  %v1023_v62 = vrot.slane %v1008_v58, %v1022_v57 }
 0x39f   :  { %v2210_v63 = vpop.f32.mrf.mxu0 }
 0x3a0   :  { %v1018_v0 = vmul.f32 %v1015_v61, %v2831_v8  ;;  %v1019_v1 = vmul.f32 %v1015_v61, %v2829_v7  ;;  %v1016_v5 = vmul.f32 %v1015_v61, %v2821_v60  ;;  %v1017_v6 = vmul.f32 %v1015_v61, %v2819_v59  ;;  %v2412_v8 = vld [vmem:[%s3032_s2 + $0xb0] sm:$0xff]   ;;  %v2413_v59 = vld [vmem:[%s3032_s2 + $0xa8] sm:$0xff]   ;;  %v2414_v60 = vld [vmem:[%s3032_s2 + $0xa0] sm:$0xff]  }
 0x3a1   :  { %v2415_v7 = vld [vmem:[%s3032_s2 + $0x98] sm:$0xff]  }
 0x3a2   :  { %v1026_v9 = vadd.f32 %v1023_v62, %v1018_v0  ;;  %v1027_v10 = vadd.f32 %v1023_v62, %v1019_v1  ;;  %v1024_v11 = vadd.f32 %v1023_v62, %v1016_v5  ;;  %v1025_v12 = vadd.f32 %v1023_v62, %v1017_v6 }
 0x3a4   :  { %v1028_v13 = vmax.f32 %v1024_v11, 0.0  ;;  %v1029_v14 = vmax.f32 %v1025_v12, 0.0  ;;  %v1030_v15 = vmax.f32 %v1026_v9, 0.0  ;;  %v1031_v37 = vmax.f32 %v1027_v10, 0.0 }
 0x3a6   :  { %v1032_v38 = vpack.c.bf16 %v1029_v14, %v1028_v13  ;;  %v1033_v39 = vpack.c.bf16 %v1031_v37, %v1030_v15 }
 0x3a8   :  { %2227 = vmatprep.mubr.bf16.mxu0 %v1032_v38  ;;  %2247 = vmatprep.mubr.bf16.mxu1 %v1032_v38 }
 0x3a9   :  { %2228 = vmatmul.mubr.bf16.vlgmr.msra.gmra.mxu0 %v1033_v39  ;;  %2248 = vmatmul.mubr.bf16.vlgmr.msra.gmra.mxu1 %v1033_v39 }
 0x3aa   :  { %2252 = vmatpush3.bf16.msra.mxu0 %v2411_v56  ;;  %2267 = vmatprep.mubr.bf16.mxu0 %v1032_v38 }
 0x3ab   :  { %2253 = vmatprep.subr.bf16.mxu0 %v2412_v8  ;;  %2279 = vmatprep.mubr.msk.f32.mxu1 %vm618_vm0, %v2648_v52  ;;  %v2417_v52 = vld [vmem:[%s3032_s2 + $0x88] sm:$0xff]  }
 0x3ae   :  { %2254 = vmatpush3.bf16.msra.mxu0 %v2412_v8 }
 0x3af   :  { %2255 = vmatprep.subr.bf16.mxu0 %v2413_v59 }
 0x3b2   :  { %2256 = vmatpush3.bf16.msra.mxu0 %v2413_v59 }
 0x3b3   :  { %2257 = vmatprep.subr.bf16.mxu0 %v2414_v60 }
 0x3b6   :  { %2258 = vmatpush3.bf16.msra.mxu0 %v2414_v60 }
 0x3b7   :  { %2259 = vmatprep.subr.bf16.mxu0 %v2415_v7 }
 0x3ba   :  { %2260 = vmatpush3.bf16.msra.mxu0 %v2415_v7 }
 0x3bb   :  { %2261 = vmatprep.subr.bf16.mxu0 %v2416_v40 }
 0x3be   :  { %2262 = vmatpush3.bf16.msra.mxu0 %v2416_v40 }
 0x3bf   :  { %2263 = vmatprep.subr.bf16.mxu0 %v2417_v52 }
 0x3c2   :  { %2264 = vmatpush3.bf16.msra.mxu0 %v2417_v52 }
 0x3c3   :  { %2265 = vmatprep.subr.bf16.mxu0 %v2418_v41 }
 0x3c6   :  { %2266 = vmatpush3.bf16.msra.mxu0 %v2418_v41  ;;  %v1649_v41 = vld [vmem:[%s3034_s4] sm:$0x1] }
 0x3c7   :  { %2334 = vmatprep.subr.mxu0 %v2423_v20 }
 0x3c9   :  { %2268 = vmatmul.mubr.bf16.vlgmr.msra.gmra.mxu0 %v1033_v39 }
 0x3ca   :  { %2335 = vmatpush3.msra.mxu0 %v2847_v51  ;;  %2336 = vmatprep.mubr.msk.f32.mxu0 %vm2424_vm1, %v2423_v20 }
 0x469   :  { %v2229_v42 = vpop.f32.mrf.mxu0 }
 0x46b   :  { %v1132_v43 = vpop.f32.mrf.mxu0 }
 0x46d   :  { %v2230_v45 = vpop.f32.mrf.mxu0 }
 0x46e   :  { %2271 = vmatprep.subr.mxu1 %v2230_v45 }
 0x46f   :  { %2272 = vmatpush3.msra.mxu1 %v2230_v45  ;;  %v1135_v46 = vpop.f32.mrf.mxu0  ;;  %v1656_v45 = vld [vmem:[%s3034_s4 + $0x1] sm:$0x1] }
 0x470   :  { %2273 = vmatprep.subr.mxu1 %v2229_v42 }
 0x471   :  { %2274 = vmatpush3.msra.mxu1 %v2229_v42 }
 0x472   :  { %2275 = vmatprep.subr.mxu1 %v1135_v46 }
 0x473   :  { %2276 = vmatpush3.msra.mxu1 %v1135_v46 }
 0x474   :  { %2277 = vmatprep.subr.mxu1 %v1132_v43 }
 0x475   :  { %2278 = vmatpush3.msra.mxu1 %v1132_v43 }
 0x476   :  { %2280 = vmatmul.mubr.msk.f32.vlgmr.msra.gmra.mxu1 %vm618_vm0, %v2663_v2 }
 0x477   :  { %2282 = vmatprep.mubr.msk.f32.mxu1 %vm618_vm0, %v2668_v3 }
 0x47a   :  { %2283 = vmatmul.mubr.msk.f32.gmra.mxu1 %vm618_vm0, %v2677_v4 }
 0x47b   :  { %2293 = vmatprep.mubr.msk.f32.mxu1 %vm618_vm0, %v2656_v53  ;;  %v2249_v53 = vpop.f32.mrf.mxu1 }
 0x47d   :  { %v1246_v2 = vpop.f32.mrf.mxu1 }
 0x47f   :  { %v2250_v3 = vpop.f32.mrf.mxu1 }
 0x481   :  { %v1249_v4 = vpop.f32.mrf.mxu1 }
 0x489   :  { %v2269_v51 = vpop.f32.mrf.mxu0 }
 0x48b   :  { %v1360_v47 = vpop.f32.mrf.mxu0 }
 0x48d   :  { %v2270_v48 = vpop.f32.mrf.mxu0 }
 0x48e   :  { %2285 = vmatprep.subr.mxu1 %v2270_v48 }
 0x48f   :  { %2286 = vmatpush3.msra.mxu1 %v2270_v48  ;;  %v1363_v49 = vpop.f32.mrf.mxu0 }
 0x490   :  { %2287 = vmatprep.subr.mxu1 %v2269_v51 }
 0x491   :  { %2288 = vmatpush3.msra.mxu1 %v2269_v51 }
 0x492   :  { %2289 = vmatprep.subr.mxu1 %v1363_v49 }
 0x493   :  { %2290 = vmatpush3.msra.mxu1 %v1363_v49 }
 0x494   :  { %2291 = vmatprep.subr.mxu1 %v1360_v47 }
 0x495   :  { %2292 = vmatpush3.msra.mxu1 %v1360_v47 }
 0x496   :  { %2294 = vmatmul.mubr.msk.f32.vlgmr.msra.gmra.mxu1 %vm618_vm0, %v2684_v17  ;;  %2299 = vmatprep.subr.mxu1 %v2423_v20 }
 0x497   :  { %2296 = vmatprep.mubr.msk.f32.mxu1 %vm618_vm0, %v2689_v18  ;;  %2300 = vmatpush3.msra.mxu1 %v2706_v21 }
 0x498   :  { %2301 = vmatprep.subr.mxu1 %v2423_v20 }
 0x499   :  { %2302 = vmatpush3.msra.mxu1 %v2711_v22 }
 0x49a   :  { %2297 = vmatmul.mubr.msk.f32.gmra.mxu1 %vm618_vm0, %v2698_v19  ;;  %2303 = vmatprep.subr.mxu1 %v2423_v20 }
 0x49b   :  { %2304 = vmatpush3.msra.mxu1 %v2721_v23  ;;  %2331 = vmatprep.mubr.msk.f32.mxu1 %vm2424_vm1, %v2423_v20 }
 0x49c   :  { %2305 = vmatprep.subr.mxu1 %v2423_v20 }
 0x49d   :  { %2306 = vmatpush3.msra.mxu1 %v2728_v24 }
 0x49e   :  { %2307 = vmatprep.subr.mxu1 %v2423_v20 }
 0x49f   :  { %2308 = vmatpush3.msra.mxu1 %v2735_v25 }
 0x4a0   :  { %2309 = vmatprep.subr.mxu1 %v2423_v20 }
 0x4a1   :  { %2310 = vmatpush3.msra.mxu1 %v2742_v26 }
 0x4a2   :  { %2311 = vmatprep.subr.mxu1 %v2423_v20 }
 0x4a3   :  { %2312 = vmatpush3.msra.mxu1 %v2749_v27 }
 0x4a4   :  { %2313 = vmatprep.subr.mxu1 %v2423_v20 }
 0x4a5   :  { %2314 = vmatpush3.msra.mxu1 %v2756_v28 }
 0x4a6   :  { %2315 = vmatprep.subr.mxu1 %v2423_v20 }
 0x4a7   :  { %2316 = vmatpush3.msra.mxu1 %v2763_v29 }
 0x4a8   :  { %2317 = vmatprep.subr.mxu1 %v2423_v20 }
 0x4a9   :  { %2318 = vmatpush3.msra.mxu1 %v2770_v30 }
 0x4aa   :  { %2319 = vmatprep.subr.mxu1 %v2423_v20 }
 0x4ab   :  { %2320 = vmatpush3.msra.mxu1 %v2777_v31 }
 0x4ac   :  { %2321 = vmatprep.subr.mxu1 %v2423_v20 }
 0x4ad   :  { %2322 = vmatpush3.msra.mxu1 %v2784_v32 }
 0x4ae   :  { %2323 = vmatprep.subr.mxu1 %v2423_v20 }
 0x4af   :  { %2324 = vmatpush3.msra.mxu1 %v2790_v33 }
 0x4b0   :  { %2325 = vmatprep.subr.mxu1 %v2423_v20 }
 0x4b1   :  { %2326 = vmatpush3.msra.mxu1 %v2796_v34 }
 0x4b2   :  { %2327 = vmatprep.subr.mxu1 %v2423_v20 }
 0x4b3   :  { %2328 = vmatpush3.msra.mxu1 %v2807_v35 }
 0x4b4   :  { %2329 = vmatprep.subr.mxu1 %v2423_v20 }
 0x4b5   :  { %2330 = vmatpush3.msra.mxu1 %v2814_v36 }
 0x536   :  { %v2281_v17 = vpop.f32.mrf.mxu1 }
 0x537   :  { %v1447_v23 = vadd.f32 %v2281_v17, %v1249_v4 }
 0x538   :  { %v1441_v18 = vpop.f32.mrf.mxu1 }
 0x539   :  { %v1442_v24 = vadd.f32 %v1441_v18, %v1246_v2 }
 0x53a   :  { %v2284_v19 = vpop.f32.mrf.mxu1 }
 0x53b   :  { %v1457_v29 = vadd.f32 %v2284_v19, %v2250_v3 }
 0x53c   :  { %v1451_v21 = vpop.f32.mrf.mxu1 }
 0x53d   :  { %v1452_v30 = vadd.f32 %v2249_v53, %v1451_v21 }
 0x556   :  { %v2295_v22 = vpop.f32.mrf.mxu1 }
 0x557   :  { %v1546_v26 = vadd.f32 %v2295_v22, %v1447_v23 }
 0x558   :  { %v1526_v25 = vpop.f32.mrf.mxu1 }
 0x559   :  { %v1545_v27 = vadd.f32 %v1526_v25, %v1442_v24  ;;  %v1559_v32 = vmul.f32 %v1546_v26, %v1546_v26 }
 0x55a   :  { %v2298_v28 = vpop.f32.mrf.mxu1 }
 0x55b   :  { %v1558_v20 = vmul.f32 %v1545_v27, %v1545_v27  ;;  %v1549_v33 = vadd.f32 %v1546_v26, %v1545_v27  ;;  %v1548_v34 = vadd.f32 %v2298_v28, %v1457_v29 }
 0x55c   :  { %v1536_v31 = vpop.f32.mrf.mxu1 }
 0x55d   :  { %v1547_v35 = vadd.f32 %v1536_v31, %v1452_v30  ;;  %v1562_v36 = vadd.f32 %v1559_v32, %v1558_v20  ;;  %v1561_v55 = vmul.f32 %v1548_v34, %v1548_v34 }
 0x55f   :  { %v1550_v50 = vadd.f32 %v1549_v33, %v1547_v35  ;;  %v1560_v54 = vmul.f32 %v1547_v35, %v1547_v35 }
 0x561   :  { %v1551_v56 = vadd.f32 %v1550_v50, %v1548_v34  ;;  %v1563_v58 = vadd.f32 %v1562_v36, %v1560_v54 }
 0x563   :  { %v1552_v61 = vrot.slane %v1551_v56, 4  ;;  %v1564_v62 = vadd.f32 %v1563_v58, %v1561_v55 }
 0x565   :  { %v1553_v63 = vadd.f32 %v1552_v61, %v1551_v56  ;;  %v1565_v0 = vrot.slane %v1564_v62, 4 }
 0x567   :  { %v1554_v1 = vrot.slane %v1553_v63, 2  ;;  %v1566_v5 = vadd.f32 %v1565_v0, %v1564_v62 }
 0x569   :  { %v1555_v6 = vadd.f32 %v1554_v1, %v1553_v63  ;;  %v1567_v9 = vrot.slane %v1566_v5, 2 }
 0x56b   :  { %v1556_v10 = vrot.slane %v1555_v6, 1  ;;  %v1568_v11 = vadd.f32 %v1567_v9, %v1566_v5 }
 0x56d   :  { %v1569_v12 = vrot.slane %v1568_v11, 1  ;;  %v1557_v13 = vadd.f32 %v1556_v10, %v1555_v6 }
 0x56f   :  { %v1570_v14 = vadd.f32 %v1569_v12, %v1568_v11 }
 0x571   :  { %v1571_v15 = vsel %vm60_vm2, %v1570_v14, %v1557_v13 }
 0x572   :  { %2332 = vmatmul.mubr.f32.vlgmr.msra.gmra.mxu1 %v1571_v15 }
 0x632   :  { %v1638_v37 = vpop.f32.mrf.mxu1 }
 0x633   :  { %v1642_v38 = vmul.f32 0.001953125, %v1638_v37 }
 0x634   :  { %v2333_v39 = vpop.f32.mrf.mxu1 }
 0x635   :  { %v1643_v8 = vmul.f32 %v1642_v38, %v1642_v38 }
 0x637   :  { %v1645_v59 = vrot.slane %v1643_v8, 7 }
 0x639   :  { %v1647_v60 = vsub.f32 %v1642_v38, %v1645_v59 }
 0x63b   :  { %v1648_v7 = vmax.f32 %v1647_v60, 0.0 }
 0x63d   :  { %v1650_v40 = vadd.f32 1e-05, %v1648_v7 }
 0x63f   :  { %2421 = vrsqrt.f32 %v1650_v40 }
 0x64c   :  { %v2422_v52 = vpop.eup %2421 }
 0x64d   :  { %v1653_v42 = vrot.slane %v2422_v52, 1 }
 0x64f   :  { %v1655_v43 = vmul.f32 %v1653_v42, %v1649_v41 }
 0x651   :  { %v1657_v46 = vmul.f32 %v1655_v43, %v1642_v38  ;;  %v1666_v48 = vrot.slane %v1655_v43, %v2875_v16 }
 0x653   :  { %v1658_v51 = vsub.f32 %v1656_v45, %v1657_v46 }
 0x655   :  { %v1662_v47 = vrot.slane %v1658_v51, %v2875_v16 }
 0x657   :  { %v1667_v49 = vsel %vm60_vm2, %v1662_v47, %v1666_v48 }
 0x658   :  { %2337 = vmatmul.mubr.msk.f32.vlgmr.msra.gmra.mxu0 %vm938_vm3, %v1667_v49 }
 0x718   :  { %v1737_v53 = vpop.f32.mrf.mxu0 }
 0x719   :  { %v1744_v2 = vrot.slane %v1737_v53, %v2875_v16  ;;  %v1752_v3 = vrot.slane %v1737_v53, %v1022_v57 }
 0x71a   :  { %v2338_v4 = vpop.f32.mrf.mxu0 }
 0x71b   :  { %v1745_v17 = vmul.f32 %v1744_v2, %v1545_v27  ;;  %v1746_v18 = vmul.f32 %v1744_v2, %v1546_v26  ;;  %v1747_v19 = vmul.f32 %v1744_v2, %v1547_v35  ;;  %v1748_v21 = vmul.f32 %v1744_v2, %v1548_v34 }
 0x71d   :  { %v1753_v22 = vadd.f32 %v1752_v3, %v1745_v17  ;;  %v1754_v23 = vadd.f32 %v1752_v3, %v1746_v18  ;;  %v1755_v24 = vadd.f32 %v1752_v3, %v1747_v19  ;;  %v1756_v25 = vadd.f32 %v1752_v3, %v1748_v21 }
 0x71f   :  { %v1757_v28 = vmax.f32 %v1753_v22, 0.0  ;;  %v1758_v29 = vmax.f32 %v1754_v23, 0.0  ;;  %v1759_v30 = vmax.f32 %v1755_v24, 0.0  ;;  %v1760_v20 = vmax.f32 %v1756_v25, 0.0 }
 0x721   :  { %1761 = vst [vmem:[%s3035_s9] sm:$0xff] %v1757_v28  ;;  %1762 = vst [vmem:[%s3035_s9 + $0x8] sm:$0xff] %v1758_v29 }
 0x722   :  { %1763 = vst [vmem:[%s3035_s9 + $0x10] sm:$0xff] %v1759_v30  ;;  %1764 = vst [vmem:[%s3035_s9 + $0x18] sm:$0xff] %v1760_v20 }

</bundles_post_ra>
